<compile_context>
chip_gen: v7x
topology: tpu7x:2x2x1
jax: 0.10.0
libtpu: 0.0.40
codegen_flags: <defaults>
</compile_context>

<pallas_src>
import jax
import jax.numpy as jnp
from jax.experimental import pallas as pl
from jax.experimental.pallas import tpu as pltpu

C_IN = 216        # conv2d35 in-channels == conv2d36 out-channels
C_MID = 54        # conv2d35 out-channels
C_MID_PAD = 128   # hidden dim zero-padded to a full lane width (exact math)


def se_mlp_kernel(x_ref, w1_ref, b1_ref, w2_ref, b2_ref, o_ref):
    # x_ref: (TM, 216) native dtype; w1_ref: (216, 128); b1_ref: (1, 128) f32;
    # w2_ref: (128, 216); b2_ref: (1, 216) f32; o_ref: (TM, 216)
    # Cast the loaded tile in-kernel to the MXU operand dtype (no extra HBM pass).
    x = x_ref[...].astype(w1_ref.dtype)
    # conv2d35 (1x1) == matmul; f32 accumulation, bias, ReLU.
    h = jnp.dot(x, w1_ref[...], preferred_element_type=jnp.float32)
    h = jnp.maximum(h + b1_ref[...], 0.0)
    # conv2d36 (1x1) == matmul; f32 accumulation, bias.
    y = jnp.dot(h.astype(w2_ref.dtype), w2_ref[...],
                preferred_element_type=jnp.float32)
    y = y + b2_ref[...]
    # Exact sigmoid via tanh: one EUP transcendental per element, scale/add on
    # the VPU (which has slack).  No approximate reciprocal.
    o_ref[...] = (0.5 * jnp.tanh(0.5 * y) + 0.5).astype(o_ref.dtype)


def _round_up(a, b):
    return ((a + b - 1) // b) * b


def se_block(x_nchw, w1, b1, w2, b2, *, mxu_dtype=jnp.float32,
             out_dtype=None, block_rows=1024):
    """x_nchw: (N, 216, 1, 1); w1: (54, 216, 1, 1); b1: (54,);
    w2: (216, 54, 1, 1); b2: (216,).  Returns (N, 216, 1, 1)."""
    N, C_in, H, W = x_nchw.shape
    assert (C_in, H, W) == (C_IN, 1, 1)
    C_mid, C_out = w1.shape[0], w2.shape[0]
    assert C_mid == C_MID and C_out == C_IN
    out_dtype = jnp.dtype(out_dtype) if out_dtype is not None else x_nchw.dtype

    # 1x1 convs on a 1x1 spatial grid == two matmuls on a flattened (N, C) view.
    # reshape on trailing singleton dims is metadata-only (no HBM pass).
    x2d = x_nchw.reshape(N, C_in)
    w1m = w1.reshape(C_mid, C_in).T.astype(mxu_dtype)    # (216, 54)
    w2m = w2.reshape(C_out, C_mid).T.astype(mxu_dtype)   # (54, 216)
    b1m = b1.reshape(1, C_mid).astype(jnp.float32)
    b2m = b2.reshape(1, C_out).astype(jnp.float32)

    # Zero-pad hidden dim 54 -> 128 lanes (exact: relu(0)=0 and zero K-rows
    # contribute 0 to the second matmul).
    w1m = jnp.pad(w1m, ((0, 0), (0, C_MID_PAD - C_mid)))
    b1m = jnp.pad(b1m, ((0, 0), (0, C_MID_PAD - C_mid)))
    w2m = jnp.pad(w2m, ((0, C_MID_PAD - C_mid), (0, 0)))

    # Row tile: sublane-aligned (multiple of 8), sized for ~8 grid steps so the
    # pipeline double-buffers x/out and v7x can shard steps across both TCs.
    # No wrapper-side padding: pl.cdiv grid + ragged last block instead.
    if N >= 8:
        tm = max(8, min(block_rows, _round_up(pl.cdiv(N, 8), 8)))
    else:
        tm = N  # full-array block (block dim == array dim satisfies the 8-rule)
    grid = (pl.cdiv(N, tm),)

    const = lambda i: (0, 0)
    w_item = jnp.dtype(mxu_dtype).itemsize
    flops = 2 * N * C_in * C_MID_PAD + 2 * N * C_MID_PAD * C_out
    bytes_accessed = (N * C_in * x2d.dtype.itemsize          # x
                      + N * C_out * out_dtype.itemsize       # out
                      + (w1m.size + w2m.size) * w_item       # weights
                      + (b1m.size + b2m.size) * 4)           # biases

    out2d = pl.pallas_call(
        se_mlp_kernel,
        out_shape=jax.ShapeDtypeStruct((N, C_out), out_dtype),
        grid_spec=pltpu.PrefetchScalarGridSpec(
            num_scalar_prefetch=0,
            grid=grid,
            in_specs=[
                pl.BlockSpec((tm, C_in), lambda i: (i, 0)),    # x row tile
                pl.BlockSpec((C_in, C_MID_PAD), const),        # w1 (VMEM-resident)
                pl.BlockSpec((1, C_MID_PAD), const),           # b1 (VMEM-resident)
                pl.BlockSpec((C_MID_PAD, C_out), const),       # w2 (VMEM-resident)
                pl.BlockSpec((1, C_out), const),               # b2 (VMEM-resident)
            ],
            out_specs=pl.BlockSpec((tm, C_out), lambda i: (i, 0)),
        ),
        compiler_params=pltpu.CompilerParams(
            dimension_semantics=("parallel",)),
        cost_estimate=pl.CostEstimate(
            flops=flops,
            transcendentals=N * C_out,       # one tanh per output element
            bytes_accessed=bytes_accessed),
    )(x2d, w1m, b1m, w2m, b2m)

    return out2d.reshape(N, C_out, 1, 1)


def reference(x_nchw, w1, b1, w2, b2):
    N = x_nchw.shape[0]
    x2d = x_nchw.reshape(N, C_IN).astype(jnp.float32)
    h = jnp.maximum(x2d @ w1.reshape(C_MID, C_IN).T + b1, 0.0)
    y = h @ w2.reshape(C_IN, C_MID).T + b2
    return jax.nn.sigmoid(y).reshape(N, C_IN, 1, 1)


if __name__ == "__main__":
    key = jax.random.PRNGKey(0)
    k_x, k_w1, k_b1, k_w2, k_b2, k_xb = jax.random.split(key, 6)

    lim1 = 1.0 / (C_IN ** 0.5)
    lim2 = 1.0 / (C_MID ** 0.5)
    w1 = jax.random.uniform(k_w1, (C_MID, C_IN, 1, 1), jnp.float32, -lim1, lim1)
    b1 = jax.random.uniform(k_b1, (C_MID,), jnp.float32, -lim1, lim1)
    w2 = jax.random.uniform(k_w2, (C_IN, C_MID, 1, 1), jnp.float32, -lim2, lim2)
    b2 = jax.random.uniform(k_b2, (C_IN,), jnp.float32, -lim2, lim2)

    # Small batch consistent with the traced module (it used batch 1).
    x = jax.random.normal(k_x, (2, C_IN, 1, 1), dtype=jnp.float32)
    ref = reference(x, w1, b1, w2, b2)
    out = jax.block_until_ready(se_block(x, w1, b1, w2, b2))
    assert out.shape == (2, C_IN, 1, 1)
    assert bool(jnp.all(jnp.isfinite(out)))
    assert jnp.allclose(out, ref, atol=2e-3, rtol=2e-3)

    # Batch that is not a multiple of the tile: exercises the ragged last
    # block and the multi-step (pipelined / megacore-shardable) grid.
    xb = jax.random.normal(k_xb, (300, C_IN, 1, 1), dtype=jnp.float32)
    refb = reference(xb, w1, b1, w2, b2)
    outb = jax.block_until_ready(se_block(xb, w1, b1, w2, b2))
    assert outb.shape == (300, C_IN, 1, 1)
    assert jnp.allclose(outb, refb, atol=2e-3, rtol=2e-3)

    # bf16 MXU operands (f32 I/O, f32 accumulation): looser tolerance.
    out_bf = jax.block_until_ready(
        se_block(xb, w1, b1, w2, b2, mxu_dtype=jnp.bfloat16))
    assert out_bf.dtype == jnp.float32
    assert jnp.allclose(out_bf, refb, atol=4e-2, rtol=4e-2)

    print("KERNEL_OK")
</pallas_src>

<mosaic_0001>
module attributes {stable_mosaic.version = 11 : i64} {
  func.func @se_mlp_kernel(%arg0: i32, %arg1: memref<2x216xf32, #tpu.memory_space<vmem>>, %arg2: memref<216x128xf32, #tpu.memory_space<vmem>>, %arg3: memref<1x128xf32, #tpu.memory_space<vmem>>, %arg4: memref<128x216xf32, #tpu.memory_space<vmem>>, %arg5: memref<1x216xf32, #tpu.memory_space<vmem>>, %arg6: memref<2x216xf32, #tpu.memory_space<vmem>>) attributes {dimension_semantics = [#tpu.dimension_semantics<parallel>], iteration_bounds = array<i64: 1>, scalar_prefetch = 0 : i64, scratch_operands = 0 : i64, tpu.core_type = #tpu.core_type<tc>, window_params = [{transform_indices = @transform_0, window_bounds = array<i64: 2, 216>}, {pipeline_mode = #tpu.pipeline_mode<synchronous>, transform_indices = @transform_1, window_bounds = array<i64: 216, 128>}, {pipeline_mode = #tpu.pipeline_mode<synchronous>, transform_indices = @transform_2, window_bounds = array<i64: 1, 128>}, {pipeline_mode = #tpu.pipeline_mode<synchronous>, transform_indices = @transform_3, window_bounds = array<i64: 128, 216>}, {pipeline_mode = #tpu.pipeline_mode<synchronous>, transform_indices = @transform_4, window_bounds = array<i64: 1, 216>}, {transform_indices = @transform_5, window_bounds = array<i64: 2, 216>}]} {
    %c0 = arith.constant 0 : index
    %c0_0 = arith.constant 0 : index
    %0 = vector.load %arg1[%c0, %c0_0] : memref<2x216xf32, #tpu.memory_space<vmem>>, vector<2x216xf32>
    %c0_1 = arith.constant 0 : index
    %c0_2 = arith.constant 0 : index
    %1 = vector.load %arg2[%c0_1, %c0_2] : memref<216x128xf32, #tpu.memory_space<vmem>>, vector<216x128xf32>
    %cst = arith.constant dense<0.000000e+00> : vector<2x128xf32>
    %2 = tpu.matmul %0, %1, %cst {dimension_numbers = #tpu.dot_dimension_numbers<[1], [0], [0], [1], [0, 0, 1, 1], [], []>} : vector<2x216xf32>, vector<216x128xf32>, vector<2x128xf32> -> vector<2x128xf32>
    %c0_3 = arith.constant 0 : index
    %c0_4 = arith.constant 0 : index
    %3 = vector.load %arg3[%c0_3, %c0_4] : memref<1x128xf32, #tpu.memory_space<vmem>>, vector<1x128xf32>
    %4 = vector.broadcast %3 : vector<1x128xf32> to vector<2x128xf32>
    %5 = arith.addf %2, %4 : vector<2x128xf32>
    %cst_5 = arith.constant 0.000000e+00 : f32
    %6 = vector.broadcast %cst_5 : f32 to vector<2x128xf32>
    %7 = arith.maximumf %5, %6 : vector<2x128xf32>
    %c0_6 = arith.constant 0 : index
    %c0_7 = arith.constant 0 : index
    %8 = vector.load %arg4[%c0_6, %c0_7] : memref<128x216xf32, #tpu.memory_space<vmem>>, vector<128x216xf32>
    %cst_8 = arith.constant dense<0.000000e+00> : vector<2x216xf32>
    %9 = tpu.matmul %7, %8, %cst_8 {dimension_numbers = #tpu.dot_dimension_numbers<[1], [0], [0], [1], [0, 0, 1, 1], [], []>} : vector<2x128xf32>, vector<128x216xf32>, vector<2x216xf32> -> vector<2x216xf32>
    %c0_9 = arith.constant 0 : index
    %c0_10 = arith.constant 0 : index
    %10 = vector.load %arg5[%c0_9, %c0_10] : memref<1x216xf32, #tpu.memory_space<vmem>>, vector<1x216xf32>
    %11 = vector.broadcast %10 : vector<1x216xf32> to vector<2x216xf32>
    %12 = arith.addf %9, %11 : vector<2x216xf32>
    %cst_11 = arith.constant 5.000000e-01 : f32
    %13 = vector.broadcast %cst_11 : f32 to vector<2x216xf32>
    %14 = arith.mulf %13, %12 : vector<2x216xf32>
    %15 = math.tanh %14 : vector<2x216xf32>
    %cst_12 = arith.constant 5.000000e-01 : f32
    %16 = vector.broadcast %cst_12 : f32 to vector<2x216xf32>
    %17 = arith.mulf %16, %15 : vector<2x216xf32>
    %cst_13 = arith.constant 5.000000e-01 : f32
    %18 = vector.broadcast %cst_13 : f32 to vector<2x216xf32>
    %19 = arith.addf %17, %18 : vector<2x216xf32>
    %c0_14 = arith.constant 0 : index
    %c0_15 = arith.constant 0 : index
    %20 = vector.load %arg6[%c0_14, %c0_15] : memref<2x216xf32, #tpu.memory_space<vmem>>, vector<2x216xf32>
    tpu.vector_store %arg6[%c0_14, %c0_15], %19 {strides = array<i32>} : memref<2x216xf32, #tpu.memory_space<vmem>>, vector<2x216xf32>,
    return
  }
  func.func @transform_0(%arg0: i32) -> (i32, i32) {
    %c0_i32 = arith.constant 0 : i32
    %c0_i32_0 = arith.constant 0 : i32
    return %arg0, %c0_i32 : i32, i32
  }
  func.func @transform_1(%arg0: i32) -> (i32, i32) {
    %c0_i32 = arith.constant 0 : i32
    %c0_i32_0 = arith.constant 0 : i32
    %c0_i32_1 = arith.constant 0 : i32
    return %c0_i32, %c0_i32_0 : i32, i32
  }
  func.func @transform_2(%arg0: i32) -> (i32, i32) {
    %c0_i32 = arith.constant 0 : i32
    %c0_i32_0 = arith.constant 0 : i32
    %c0_i32_1 = arith.constant 0 : i32
    return %c0_i32, %c0_i32_0 : i32, i32
  }
  func.func @transform_3(%arg0: i32) -> (i32, i32) {
    %c0_i32 = arith.constant 0 : i32
    %c0_i32_0 = arith.constant 0 : i32
    %c0_i32_1 = arith.constant 0 : i32
    return %c0_i32, %c0_i32_0 : i32, i32
  }
  func.func @transform_4(%arg0: i32) -> (i32, i32) {
    %c0_i32 = arith.constant 0 : i32
    %c0_i32_0 = arith.constant 0 : i32
    %c0_i32_1 = arith.constant 0 : i32
    return %c0_i32, %c0_i32_0 : i32, i32
  }
  func.func @transform_5(%arg0: i32) -> (i32, i32) {
    %c0_i32 = arith.constant 0 : i32
    %c0_i32_0 = arith.constant 0 : i32
    return %arg0, %c0_i32 : i32, i32
  }
}

</mosaic_0001>

<bundles_post_ra>
// kernel: tpu_custom_call.1
= control target key start
LH: loop header
LB: loop body
LE: loop exit
PB: predicated region body
PF: predicated region fallthrough
CT: control target
= control target key end

     0   :  { %v398_v3 = vmov 0.0|0.0   ;;  %v399_v6 = vmov 0.0   ;;  %vm66_vm0 = vcmask 719872   ;;  %s651_s0 = inlined_call_operand.vmem [shape: f32[2,216], index: 0, kind: input, shape index: {}]   ;;  %s652_s1 = inlined_call_operand.vmem [shape: f32[216,128], index: 1, kind: input, shape index: {}]   ;;  %s653_s2 = inlined_call_operand.vmem [shape: f32[1,128], index: 2, kind: input, shape index: {}]   ;;  %s654_s3 = inlined_call_operand.vmem [shape: f32[128,216], index: 3, kind: input, shape index: {}]   ;;  %s655_s4 = inlined_call_operand.vmem [shape: f32[1,216], index: 4, kind: input, shape index: {}]   ;;  %s656_s5 = inlined_call_operand.hbm [shape: f32[2,216], index: 5, kind: output, shape index: {}]  }
   0x1   :  { %v22_v0 = vld [vmem:[%s652_s1] sm:$0xff]  ;;  %v23_v1 = vld [vmem:[%s652_s1 + $0x8] sm:$0xff]  ;;  %v24_v2 = vld [vmem:[%s652_s1 + $0x10] sm:$0xff]  ;;  %295 = vmatprep.subr.bf16.mxu0 %v398_v3  ;;  %248 = vmatprep.mubr.f32.mxu1 %v399_v6 }
   0x2   :  { %v296_v4 = vpack.c.bf16 %v23_v1, %v22_v0  ;;  %v25_v5 = vld [vmem:[%s652_s1 + $0x18] sm:$0xff]  ;;  %v26_v8 = vld [vmem:[%s652_s1 + $0x20] sm:$0xff]  ;;  %v27_v9 = vld [vmem:[%s652_s1 + $0x28] sm:$0xff] }
   0x3   :  { %v299_v7 = vpack.c.bf16 %v25_v5, %v24_v2  ;;  %v302_v10 = vpack.c.bf16 %v27_v9, %v26_v8  ;;  %v28_v11 = vld [vmem:[%s652_s1 + $0x30] sm:$0xff]  ;;  %v29_v12 = vld [vmem:[%s652_s1 + $0x38] sm:$0xff]  ;;  %v463_v13 = vld.sshfl [vmem:[%s651_s0] sm:$0x33 pattern:$0x76325410] }
   0x4   :  { %297 = vmatpush1.bf16.msra.mxu0 %v296_v4  ;;  %v141_v14 = vld [vmem:[%s654_s3 + $0x8] sm:$0xff]  ;;  %v143_v15 = vld [vmem:[%s654_s3 + $0x18] sm:$0xff]  ;;  %v30_v16 = vld [vmem:[%s652_s1 + $0x40] sm:$0xff]  ;;  %v64_v17 = vcombine.high %v463_v13, %v463_v13  ;;  %v305_v22 = vpack.c.bf16 %v29_v12, %v28_v11 }
   0x5   :  { %298 = vmatprep.subr.bf16.mxu0 %v398_v3  ;;  %v334_v18 = vpack.c.bf16 %v143_v15, %v141_v14  ;;  %v140_v19 = vld [vmem:[%s654_s3] sm:$0xff]  ;;  %v142_v20 = vld [vmem:[%s654_s3 + $0x10] sm:$0xff]  ;;  %v145_v21 = vld [vmem:[%s654_s3 + $0x28] sm:$0xff] }
   0x6   :  { %v336_v23 = vpack.c.bf16 %v142_v20, %v140_v19  ;;  %v147_v24 = vld [vmem:[%s654_s3 + $0x38] sm:$0xff]  ;;  %v144_v25 = vld [vmem:[%s654_s3 + $0x20] sm:$0xff]  ;;  %v146_v26 = vld [vmem:[%s654_s3 + $0x30] sm:$0xff]  ;;  %294 = vmatprep.mubr.msk.f32.mxu0 %vm66_vm0, %v64_v17 }
   0x7   :  { %v31_v27 = vld [vmem:[%s652_s1 + $0x48] sm:$0xff]  ;;  %v338_v28 = vpack.c.bf16 %v147_v24, %v145_v21  ;;  %v151_v30 = vld [vmem:[%s654_s3 + $0x58] sm:$0xff]  ;;  %335 = vmatprep.subr.bf16.mxu1 %v334_v18  ;;  %v340_v31 = vpack.c.bf16 %v146_v26, %v144_v25  ;;  %v32_v33 = vld [vmem:[%s652_s1 + $0x50] sm:$0xff] }
   0x8   :  { %300 = vmatpush1.bf16.msra.mxu0 %v299_v7  ;;  %v149_v29 = vld [vmem:[%s654_s3 + $0x48] sm:$0xff]  ;;  %337 = vmatpush1.bf16.msra.mxu1 %v336_v23  ;;  %v308_v32 = vpack.c.bf16 %v31_v27, %v30_v16  ;;  %v148_v35 = vld [vmem:[%s654_s3 + $0x40] sm:$0xff]  ;;  %v150_v36 = vld [vmem:[%s654_s3 + $0x50] sm:$0xff] }
   0x9   :  { %301 = vmatprep.subr.bf16.mxu0 %v398_v3  ;;  %339 = vmatprep.subr.bf16.mxu1 %v338_v28  ;;  %v342_v34 = vpack.c.bf16 %v151_v30, %v149_v29  ;;  %v33_v37 = vld [vmem:[%s652_s1 + $0x58] sm:$0xff]  ;;  %v153_v38 = vld [vmem:[%s654_s3 + $0x68] sm:$0xff]  ;;  %v34_v40 = vld [vmem:[%s652_s1 + $0x60] sm:$0xff]  ;;  %v344_v41 = vpack.c.bf16 %v150_v36, %v148_v35 }
   0xa   :  { %v155_v39 = vld [vmem:[%s654_s3 + $0x78] sm:$0xff]  ;;  %v311_v42 = vpack.c.bf16 %v33_v37, %v32_v33  ;;  %v152_v44 = vld [vmem:[%s654_s3 + $0x60] sm:$0xff]  ;;  %v154_v45 = vld [vmem:[%s654_s3 + $0x70] sm:$0xff] }
   0xb   :  { %v346_v43 = vpack.c.bf16 %v155_v39, %v153_v38 }
   0xc   :  { %303 = vmatpush1.bf16.msra.mxu0 %v302_v10  ;;  %341 = vmatpush1.bf16.msra.mxu1 %v340_v31 }
   0xd   :  { %304 = vmatprep.subr.bf16.mxu0 %v398_v3  ;;  %343 = vmatprep.subr.bf16.mxu1 %v342_v34 }
  0x10   :  { %306 = vmatpush1.bf16.msra.mxu0 %v305_v22 }
  0x11   :  { %307 = vmatprep.subr.bf16.mxu0 %v398_v3 }
  0x14   :  { %309 = vmatpush1.bf16.msra.mxu0 %v308_v32 }
  0x15   :  { %10 = vsyncpa [#allocation3], 0  ;;  %310 = vmatprep.subr.bf16.mxu0 %v398_v3  ;;  %v35_v46 = vld [vmem:[%s652_s1 + $0x68] sm:$0xff]  ;;  %v159_v48 = vld [vmem:[%s654_s3 + $0x98] sm:$0xff]  ;;  %345 = vmatpush1.bf16.msra.mxu1 %v344_v41  ;;  %v348_v49 = vpack.c.bf16 %v154_v45, %v152_v44  ;;  %v174_v33 = vlaneseq  ;;  %vm274_vm1 = vcmask 1041408   ;;  %vm275_vm2 = vcmask 715778  }
  0x16   :  { %v157_v47 = vld [vmem:[%s654_s3 + $0x88] sm:$0xff]  ;;  %v314_v50 = vpack.c.bf16 %v35_v46, %v34_v40  ;;  %v36_v51 = vld [vmem:[%s652_s1 + $0x70] sm:$0xff]  ;;  %347 = vmatprep.subr.bf16.mxu1 %v346_v43  ;;  %v156_v53 = vld [vmem:[%s654_s3 + $0x80] sm:$0xff]  ;;  %v400_v46 = vmov 1983009808  }
  0x17   :  { %v350_v52 = vpack.c.bf16 %v159_v48, %v157_v47  ;;  %v158_v54 = vld [vmem:[%s654_s3 + $0x90] sm:$0xff]  ;;  %v37_v55 = vld [vmem:[%s652_s1 + $0x78] sm:$0xff]  ;;  %v161_v56 = vld [vmem:[%s654_s3 + $0xa8] sm:$0xff]  ;;  %v175_v34 = vshrl.u32 %v174_v33, 7  ;;  %v267_v47 = vunpack.c.l.s4 %v400_v46 }
  0x18   :  { %312 = vmatpush1.bf16.msra.mxu0 %v311_v42  ;;  %v163_v57 = vld [vmem:[%s654_s3 + $0xb8] sm:$0xff]  ;;  %v352_v58 = vpack.c.bf16 %v158_v54, %v156_v53  ;;  %v317_v59 = vpack.c.bf16 %v37_v55, %v36_v51  ;;  %v38_v60 = vld [vmem:[%s652_s1 + $0x80] sm:$0xff]  ;;  %v162_v63 = vld [vmem:[%s654_s3 + $0xb0] sm:$0xff] }
  0x19   :  { %313 = vmatprep.subr.bf16.mxu0 %v398_v3  ;;  %349 = vmatpush1.bf16.msra.mxu1 %v348_v49  ;;  %v354_v61 = vpack.c.bf16 %v163_v57, %v161_v56  ;;  %v160_v62 = vld [vmem:[%s654_s3 + $0xa0] sm:$0xff]  ;;  %v39_v0 = vld [vmem:[%s652_s1 + $0x88] sm:$0xff]  ;;  %v167_v2 = vld [vmem:[%s654_s3 + $0xd8] sm:$0xff]  ;;  %v176_v35 = vsub.s32 0, %v175_v34  ;;  %v180_v37 = vsub.s32 1, %v175_v34  ;;  %v268_v49 = vunpack.c.0.s8 %v267_v47 }
  0x1a   :  { %351 = vmatprep.subr.bf16.mxu1 %v350_v52  ;;  %v165_v1 = vld [vmem:[%s654_s3 + $0xc8] sm:$0xff]  ;;  %v356_v4 = vpack.c.bf16 %v162_v63, %v160_v62  ;;  %v320_v5 = vpack.c.bf16 %v39_v0, %v38_v60  ;;  %v164_v8 = vld [vmem:[%s654_s3 + $0xc0] sm:$0xff]  ;;  %v166_v9 = vld [vmem:[%s654_s3 + $0xd0] sm:$0xff] }
  0x1b   :  { %v358_v7 = vpack.c.bf16 %v167_v2, %v165_v1  ;;  %v40_v10 = vld [vmem:[%s652_s1 + $0x90] sm:$0xff]  ;;  %v41_v11 = vld [vmem:[%s652_s1 + $0x98] sm:$0xff]  ;;  %v360_v12 = vpack.c.bf16 %v166_v9, %v164_v8  ;;  %v42_v15 = vld [vmem:[%s652_s1 + $0xa0] sm:$0xff]  ;;  %v271_v55 = vsub.s32 %v268_v49, %v175_v34 }
  0x1c   :  { %315 = vmatpush1.bf16.msra.mxu0 %v314_v50  ;;  %v323_v14 = vpack.c.bf16 %v41_v11, %v40_v10  ;;  %v43_v16 = vld [vmem:[%s652_s1 + $0xa8] sm:$0xff]  ;;  %v44_v18 = vld [vmem:[%s652_s1 + $0xb0] sm:$0xff]  ;;  %v45_v19 = vld [vmem:[%s652_s1 + $0xb8] sm:$0xff] }
  0x1d   :  { %316 = vmatprep.subr.bf16.mxu0 %v398_v3  ;;  %353 = vmatpush1.bf16.msra.mxu1 %v352_v58  ;;  %v326_v17 = vpack.c.bf16 %v43_v16, %v42_v15  ;;  %v329_v20 = vpack.c.bf16 %v45_v19, %v44_v18  ;;  %v46_v21 = vld [vmem:[%s652_s1 + $0xc0] sm:$0xff]  ;;  %v47_v22 = vld [vmem:[%s652_s1 + $0xc8] sm:$0xff]  ;;  %v48_v24 = vld [vmem:[%s652_s1 + $0xd0] sm:$0xff] }
  0x1e   :  { %355 = vmatprep.subr.bf16.mxu1 %v354_v61  ;;  %v332_v23 = vpack.c.bf16 %v47_v22, %v46_v21  ;;  %v169_v25 = vld [vmem:[%s654_s3 + $0xe8] sm:$0xff]  ;;  %v171_v26 = vld [vmem:[%s654_s3 + $0xf8] sm:$0xff]  ;;  %v172_v36 = vld [vmem:[%s655_s4] sm:$0x3] }
  0x1f   :  { %v362_v27 = vpack.c.bf16 %v171_v26, %v169_v25  ;;  %v177_v38 = vrot.slane %v172_v36, %v176_v35  ;;  %v181_v39 = vrot.slane %v172_v36, %v180_v37  ;;  %vm276_vm3 = vmor %vm275_vm2, %vm274_vm1 }
  0x20   :  { %318 = vmatpush1.bf16.msra.mxu0 %v317_v59 }
  0x21   :  { %319 = vmatprep.subr.bf16.mxu0 %v398_v3  ;;  %357 = vmatpush1.bf16.msra.mxu1 %v356_v4 }
  0x22   :  { %359 = vmatprep.subr.bf16.mxu1 %v358_v7 }
  0x24   :  { %321 = vmatpush1.bf16.msra.mxu0 %v320_v5 }
  0x25   :  { %322 = vmatprep.subr.bf16.mxu0 %v398_v3  ;;  %361 = vmatpush1.bf16.msra.mxu1 %v360_v12 }
  0x26   :  { %363 = vmatprep.subr.bf16.mxu1 %v362_v27 }
  0x28   :  { %324 = vmatpush1.bf16.msra.mxu0 %v323_v14 }
  0x29   :  { %325 = vmatprep.subr.bf16.mxu0 %v398_v3 }
  0x2c   :  { %327 = vmatpush1.bf16.msra.mxu0 %v326_v17 }
  0x2d   :  { %328 = vmatprep.subr.bf16.mxu0 %v398_v3 }
  0x30   :  { %330 = vmatpush1.bf16.msra.mxu0 %v329_v20 }
  0x31   :  { %331 = vmatprep.subr.bf16.mxu0 %v398_v3  ;;  %v168_v3 = vld [vmem:[%s654_s3 + $0xe0] sm:$0xff] }
  0x34   :  { %333 = vmatpush1.bf16.msra.mxu0 %v332_v23 }
  0x35   :  { %121 = vmatprep.subr.mxu0 %v399_v6  ;;  %v170_v6 = vld [vmem:[%s654_s3 + $0xf0] sm:$0xff] }
  0x36   :  { %v364_v28 = vpack.c.bf16 %v170_v6, %v168_v3 }
  0x38   :  { %122 = vmatpush1.msra.mxu0 %v48_v24  ;;  %365 = vmatpush1.bf16.msra.mxu1 %v364_v28 }
  0x39   :  { %134 = vmatmul.mubr.f32.vlgmr.msra.gmra.mrb[0].mxu0 %v463_v13  ;;  %v292_v13 = vld [vmem:[%s653_s2] ss:$0 sm:$0xff]  ;;  %s401_s2 = smov [#allocation2]  }
  0x3a   :  { %s284_s3 = sshll.u32 %s401_s2, 4  ;;  %s285_s3 = int_to_ptr.vmem [resolvable:$true] %s284_s3 }
  0x3b   :  { %s374_s4 = scalar_lea.vmem %s285_s3, 64  ;;  %p379_p1 = scmp.lt.s32.totalorder %s285_s3, %s285_s3 }
  0x3c   :  { %p375_p0 = scmp.ne.s32.totalorder %s285_s3, %s374_s4  ;;  %p380_p2 = scmp.lt.s32.totalorder %s374_s4, %s374_s4 }
  0x3e   :  { %p381_p3 = por %p380_p2, %p379_p1 }
  0x40   :  { %p382_p4 = pnand %p381_p3, %p375_p0 }
 0x10c   :  { %v135_v29 = vpop.f32.mrb[0].mxu0 }
 0x10d   :  { %v136_v30 = vadd.f32 %v292_v13, %v135_v29  ;;  %v137_v31 = vpop.f32.mrb[1].mxu0 }
 0x10f   :  { %v139_v32 = vmax.f32 %v136_v30, 0.0 }
 0x111   :  { %249 = vmatmul.mubr.f32.vlgmr.msra.gmra.mrb[0].mxu1 %v139_v32 }
 0x1e4   :  { %v250_v40 = vpop.f32.mrb[0].mxu1 }
 0x1e5   :  { %v251_v41 = vadd.f32 %v250_v40, %v177_v38  ;;  %v252_v42 = vpop.f32.mrb[1].mxu1 }
 0x1e6   :  { %v253_v43 = vadd.f32 %v252_v42, %v181_v39 }
 0x1e7   :  { %v255_v44 = vmul.f32 0.5, %v251_v41 }
 0x1e8   :  { %v256_v45 = vmul.f32 0.5, %v253_v43 }
 0x1e9   :  { %370 = vtanh.f32 %v255_v44 }
 0x1ea   :  { %372 = vtanh.f32 %v256_v45 }
 0x1f3   :  { %v371_v48 = vpop.eup %370 }
 0x1f4   :  { %v373_v50 = vpop.eup %372  ;;  %v259_v51 = vmul.f32 0.5, %v371_v48 }
 0x1f5   :  { %v260_v52 = vmul.f32 0.5, %v373_v50 }
 0x1f6   :  { %v261_v53 = vadd.f32 0.5, %v259_v51 }
 0x1f7   :  { %v262_v54 = vadd.f32 0.5, %v260_v52 }
 0x1f9   :  { %v265_v56 = vcombine.low %v261_v53, %v262_v54 }
 0x1fb   :  { %v272_v57 = vrot.slane %v265_v56, %v271_v55 }
 0x1fd   :  { %277 = vst.msk [vmem:[#allocation2] sm:$0xf] %vm276_vm3, %v272_v57 }
 0x1fe   :  { %385 = shalt.err (!%p382_p4)
}
 0x1ff   :  { %s386_s14 = scalar_lea.hbm %s656_s5, 64 }
 0x200   :  { %p387_p5 = scmp.ne.s32.totalorder %s656_s5, %s386_s14  ;;  %p390_p6 = scmp.lt.u32.totalorder %s386_s14, %s656_s5 }
 0x202   :  { %p392_p7 = pnand %p390_p6, %p387_p5 }
 0x204   :  { %395 = shalt.err (!%p392_p7)
}
 0x205   :  { %287 = dma.vmem_to_hbm [thread:$0]  %s285_s3, 64, %s656_s5, [#allocation3]  }
 0x206   :  { %396 = dma.done.wait [#allocation3], 64  }
 0x207   :  { %397 = vsyncadd [#allocation3], 4294967232 }
 0x208   :  { %291 = vsyncpa [#allocation3], 1 }

</bundles_post_ra>
